<compile_context>
chip_gen: v7x
topology: tpu7x:2x2x1
jax: 0.10.0
libtpu: 0.0.40
codegen_flags: <defaults>
</compile_context>

<pallas_src>
import math

import jax
import jax.numpy as jnp
from jax.experimental import pallas as pl
from jax.experimental.pallas import tpu as pltpu

LN_EPS = 1e-5  # PyTorch nn.LayerNorm default


def _invar_encoder_kernel(x_ref, w1_ref, b1_ref, w2_ref, g_ref, b_ref, o_ref):
    # x_ref : (TM, K)  f32   -- row tile of flattened invar
    # w1_ref: (K, D)   f32   -- first linear weight, (in, out) layout
    # b1_ref: (1, D)   f32   -- first linear bias
    # w2_ref: (D, D)   f32   -- second linear weight (no bias), (in, out) layout
    # g_ref : (1, D)   f32   -- LayerNorm gamma
    # b_ref : (1, D)   f32   -- LayerNorm beta
    # o_ref : (TM, D)  f32
    x = x_ref[...]

    # Linear 1 + Tanh  (MXU matmul, f32 accumulate; tanh goes to the EUP slot).
    h = jnp.tanh(
        jnp.dot(x, w1_ref[...], preferred_element_type=jnp.float32) + b1_ref[...]
    )

    # Linear 2 (bias-free).
    y = jnp.dot(h, w2_ref[...], preferred_element_type=jnp.float32)

    # Dropout: identity in eval mode (see TODO above).

    # LayerNorm over the last (lane) dim.
    mu = jnp.mean(y, axis=-1, keepdims=True)
    yc = y - mu
    var = jnp.mean(yc * yc, axis=-1, keepdims=True)
    inv = jax.lax.rsqrt(var + LN_EPS)
    o_ref[...] = (yc * inv * g_ref[...] + b_ref[...]).astype(o_ref.dtype)


def invar_encoder_forward(invar, params, *, tm=128):
    """invar: (..., num_type) float array.
    params: (w1 (K,D), b1 (1,D), w2 (D,D), gamma (1,D), beta (1,D)).
    Returns (..., out_dim) float32."""
    w1, b1, w2, gamma, beta = params
    K, D = w1.shape
    assert invar.shape[-1] == K

    lead_shape = invar.shape[:-1]
    x = invar.reshape(-1, K).astype(jnp.float32)
    N = x.shape[0]

    # Pad token count up to a multiple of the row tile (no divisibility assert).
    n_tiles = pl.cdiv(N, tm)
    n_pad = n_tiles * tm
    if n_pad != N:
        x = jnp.pad(x, ((0, n_pad - N), (0, 0)))

    out = pl.pallas_call(
        _invar_encoder_kernel,
        out_shape=jax.ShapeDtypeStruct((n_pad, D), jnp.float32),
        grid_spec=pltpu.PrefetchScalarGridSpec(
            num_scalar_prefetch=0,
            grid=(n_tiles,),
            in_specs=[
                pl.BlockSpec((tm, K), lambda i: (i, 0)),   # row tile of inputs
                pl.BlockSpec((K, D), lambda i: (0, 0)),    # W1 (grid-invariant)
                pl.BlockSpec((1, D), lambda i: (0, 0)),    # b1
                pl.BlockSpec((D, D), lambda i: (0, 0)),    # W2
                pl.BlockSpec((1, D), lambda i: (0, 0)),    # LN gamma
                pl.BlockSpec((1, D), lambda i: (0, 0)),    # LN beta
            ],
            out_specs=pl.BlockSpec((tm, D), lambda i: (i, 0)),
        ),
        compiler_params=pltpu.CompilerParams(
            dimension_semantics=("parallel",)
        ),
    )(x, w1, b1, w2, gamma, beta)

    out = out[:N]
    return out.reshape(lead_shape + (D,))


def make_invar_encoder_params(key, out_dim, num_type):
    """Deterministic init matching the module's parameter shapes.
    Linear weights are stored in (in, out) layout so the kernel computes x @ W."""
    k1, k2, k3, k4 = jax.random.split(key, 4)
    s1 = 1.0 / math.sqrt(num_type)
    s2 = 1.0 / math.sqrt(out_dim)
    w1 = jax.random.uniform(k1, (num_type, out_dim), jnp.float32, -s1, s1)
    b1 = jax.random.uniform(k2, (1, out_dim), jnp.float32, -s1, s1)
    w2 = jax.random.uniform(k3, (out_dim, out_dim), jnp.float32, -s2, s2)
    gamma = 1.0 + 0.1 * jax.random.normal(k4, (1, out_dim), jnp.float32)
    beta = jnp.zeros((1, out_dim), jnp.float32)
    return (w1, b1, w2, gamma, beta)


def _reference_forward(invar, params):
    """Plain-JAX reference (eval-mode dropout)."""
    w1, b1, w2, gamma, beta = params
    K = invar.shape[-1]
    D = w1.shape[1]
    x = invar.reshape(-1, K).astype(jnp.float32)
    h = jnp.tanh(x @ w1 + b1)
    y = h @ w2
    mu = jnp.mean(y, axis=-1, keepdims=True)
    var = jnp.mean((y - mu) ** 2, axis=-1, keepdims=True)
    out = (y - mu) / jnp.sqrt(var + LN_EPS) * gamma + beta
    return out.reshape(invar.shape[:-1] + (D,))


if __name__ == "__main__":
    out_dim = 128    # lane-dense output (full 128-lane stores)
    num_type = 16
    B, S = 2, 8

    key = jax.random.PRNGKey(0)
    k_params, k_x = jax.random.split(key)

    params = make_invar_encoder_params(k_params, out_dim, num_type)
    invar = jax.random.normal(k_x, (B, S, num_type), dtype=jnp.float32)

    out = invar_encoder_forward(invar, params, tm=128)
    out = jax.block_until_ready(out)

    ref = _reference_forward(invar, params)
    assert out.shape == (B, S, out_dim)
    assert jnp.allclose(out, ref, atol=1e-4, rtol=1e-4), "mismatch vs reference"

    print("KERNEL_OK")
</pallas_src>

<mosaic_0001>
module attributes {stable_mosaic.version = 11 : i64} {
  func.func @_invar_encoder_kernel(%arg0: i32, %arg1: memref<128x16xf32, #tpu.memory_space<vmem>>, %arg2: memref<16x128xf32, #tpu.memory_space<vmem>>, %arg3: memref<1x128xf32, #tpu.memory_space<vmem>>, %arg4: memref<128x128xf32, #tpu.memory_space<vmem>>, %arg5: memref<1x128xf32, #tpu.memory_space<vmem>>, %arg6: memref<1x128xf32, #tpu.memory_space<vmem>>, %arg7: memref<128x128xf32, #tpu.memory_space<vmem>>) attributes {dimension_semantics = [#tpu.dimension_semantics<parallel>], iteration_bounds = array<i64: 1>, scalar_prefetch = 0 : i64, scratch_operands = 0 : i64, tpu.core_type = #tpu.core_type<tc>, window_params = [{transform_indices = @transform_0, window_bounds = array<i64: 128, 16>}, {pipeline_mode = #tpu.pipeline_mode<synchronous>, transform_indices = @transform_1, window_bounds = array<i64: 16, 128>}, {pipeline_mode = #tpu.pipeline_mode<synchronous>, transform_indices = @transform_2, window_bounds = array<i64: 1, 128>}, {pipeline_mode = #tpu.pipeline_mode<synchronous>, transform_indices = @transform_3, window_bounds = array<i64: 128, 128>}, {pipeline_mode = #tpu.pipeline_mode<synchronous>, transform_indices = @transform_4, window_bounds = array<i64: 1, 128>}, {pipeline_mode = #tpu.pipeline_mode<synchronous>, transform_indices = @transform_5, window_bounds = array<i64: 1, 128>}, {transform_indices = @transform_6, window_bounds = array<i64: 128, 128>}]} {
    %c0 = arith.constant 0 : index
    %c0_0 = arith.constant 0 : index
    %0 = vector.load %arg1[%c0, %c0_0] : memref<128x16xf32, #tpu.memory_space<vmem>>, vector<128x16xf32>
    %c0_1 = arith.constant 0 : index
    %c0_2 = arith.constant 0 : index
    %1 = vector.load %arg2[%c0_1, %c0_2] : memref<16x128xf32, #tpu.memory_space<vmem>>, vector<16x128xf32>
    %cst = arith.constant dense<0.000000e+00> : vector<128x128xf32>
    %2 = tpu.matmul %0, %1, %cst {dimension_numbers = #tpu.dot_dimension_numbers<[1], [0], [0], [1], [0, 0, 1, 1], [], []>} : vector<128x16xf32>, vector<16x128xf32>, vector<128x128xf32> -> vector<128x128xf32>
    %c0_3 = arith.constant 0 : index
    %c0_4 = arith.constant 0 : index
    %3 = vector.load %arg3[%c0_3, %c0_4] : memref<1x128xf32, #tpu.memory_space<vmem>>, vector<1x128xf32>
    %4 = vector.broadcast %3 : vector<1x128xf32> to vector<128x128xf32>
    %5 = arith.addf %2, %4 : vector<128x128xf32>
    %6 = math.tanh %5 : vector<128x128xf32>
    %c0_5 = arith.constant 0 : index
    %c0_6 = arith.constant 0 : index
    %7 = vector.load %arg4[%c0_5, %c0_6] : memref<128x128xf32, #tpu.memory_space<vmem>>, vector<128x128xf32>
    %cst_7 = arith.constant dense<0.000000e+00> : vector<128x128xf32>
    %8 = tpu.matmul %6, %7, %cst_7 {dimension_numbers = #tpu.dot_dimension_numbers<[1], [0], [0], [1], [0, 0, 1, 1], [], []>} : vector<128x128xf32>, vector<128x128xf32>, vector<128x128xf32> -> vector<128x128xf32>
    %cst_8 = arith.constant dense<0.000000e+00> : vector<128xf32>
    %9 = vector.multi_reduction <add>, %8, %cst_8 [1] : vector<128x128xf32> to vector<128xf32>
    %10 = vector.shape_cast %9 : vector<128xf32> to vector<128x1xf32>
    %cst_9 = arith.constant 1.280000e+02 : f32
    %11 = vector.broadcast %cst_9 : f32 to vector<128x1xf32>
    %12 = arith.divf %10, %11 : vector<128x1xf32>
    %13 = vector.broadcast %12 : vector<128x1xf32> to vector<128x128xf32>
    %14 = arith.subf %8, %13 : vector<128x128xf32>
    %15 = arith.mulf %14, %14 : vector<128x128xf32>
    %cst_10 = arith.constant dense<0.000000e+00> : vector<128xf32>
    %16 = vector.multi_reduction <add>, %15, %cst_10 [1] : vector<128x128xf32> to vector<128xf32>
    %17 = vector.shape_cast %16 : vector<128xf32> to vector<128x1xf32>
    %cst_11 = arith.constant 1.280000e+02 : f32
    %18 = vector.broadcast %cst_11 : f32 to vector<128x1xf32>
    %19 = arith.divf %17, %18 : vector<128x1xf32>
    %cst_12 = arith.constant 9.99999974E-6 : f32
    %20 = vector.broadcast %cst_12 : f32 to vector<128x1xf32>
    %21 = arith.addf %19, %20 : vector<128x1xf32>
    %22 = math.rsqrt %21 : vector<128x1xf32>
    %23 = vector.broadcast %22 : vector<128x1xf32> to vector<128x128xf32>
    %24 = arith.mulf %14, %23 : vector<128x128xf32>
    %c0_13 = arith.constant 0 : index
    %c0_14 = arith.constant 0 : index
    %25 = vector.load %arg5[%c0_13, %c0_14] : memref<1x128xf32, #tpu.memory_space<vmem>>, vector<1x128xf32>
    %26 = vector.broadcast %25 : vector<1x128xf32> to vector<128x128xf32>
    %27 = arith.mulf %24, %26 : vector<128x128xf32>
    %c0_15 = arith.constant 0 : index
    %c0_16 = arith.constant 0 : index
    %28 = vector.load %arg6[%c0_15, %c0_16] : memref<1x128xf32, #tpu.memory_space<vmem>>, vector<1x128xf32>
    %29 = vector.broadcast %28 : vector<1x128xf32> to vector<128x128xf32>
    %30 = arith.addf %27, %29 : vector<128x128xf32>
    %c0_17 = arith.constant 0 : index
    %c0_18 = arith.constant 0 : index
    %31 = vector.load %arg7[%c0_17, %c0_18] : memref<128x128xf32, #tpu.memory_space<vmem>>, vector<128x128xf32>
    tpu.vector_store %arg7[%c0_17, %c0_18], %30 {strides = array<i32>} : memref<128x128xf32, #tpu.memory_space<vmem>>, vector<128x128xf32>,
    return
  }
  func.func @transform_0(%arg0: i32) -> (i32, i32) {
    %c0_i32 = arith.constant 0 : i32
    %c0_i32_0 = arith.constant 0 : i32
    return %arg0, %c0_i32 : i32, i32
  }
  func.func @transform_1(%arg0: i32) -> (i32, i32) {
    %c0_i32 = arith.constant 0 : i32
    %c0_i32_0 = arith.constant 0 : i32
    %c0_i32_1 = arith.constant 0 : i32
    return %c0_i32, %c0_i32_0 : i32, i32
  }
  func.func @transform_2(%arg0: i32) -> (i32, i32) {
    %c0_i32 = arith.constant 0 : i32
    %c0_i32_0 = arith.constant 0 : i32
    %c0_i32_1 = arith.constant 0 : i32
    return %c0_i32, %c0_i32_0 : i32, i32
  }
  func.func @transform_3(%arg0: i32) -> (i32, i32) {
    %c0_i32 = arith.constant 0 : i32
    %c0_i32_0 = arith.constant 0 : i32
    %c0_i32_1 = arith.constant 0 : i32
    return %c0_i32, %c0_i32_0 : i32, i32
  }
  func.func @transform_4(%arg0: i32) -> (i32, i32) {
    %c0_i32 = arith.constant 0 : i32
    %c0_i32_0 = arith.constant 0 : i32
    %c0_i32_1 = arith.constant 0 : i32
    return %c0_i32, %c0_i32_0 : i32, i32
  }
  func.func @transform_5(%arg0: i32) -> (i32, i32) {
    %c0_i32 = arith.constant 0 : i32
    %c0_i32_0 = arith.constant 0 : i32
    %c0_i32_1 = arith.constant 0 : i32
    return %c0_i32, %c0_i32_0 : i32, i32
  }
  func.func @transform_6(%arg0: i32) -> (i32, i32) {
    %c0_i32 = arith.constant 0 : i32
    %c0_i32_0 = arith.constant 0 : i32
    return %arg0, %c0_i32 : i32, i32
  }
}

</mosaic_0001>

<bundles_post_ra>
// kernel: tpu_custom_call.1
= control target key start
LH: loop header
LB: loop body
LE: loop exit
PB: predicated region body
PF: predicated region fallthrough
CT: control target
= control target key end

     0   :  { %vm49_vm0 = vcmask 130048   ;;  %s1302_s0 = inlined_call_operand.vmem [shape: f32[128,16], index: 0, kind: input, shape index: {}]   ;;  %s1303_s1 = inlined_call_operand.vmem [shape: f32[16,128], index: 1, kind: input, shape index: {}]   ;;  %s1304_s2 = inlined_call_operand.vmem [shape: f32[1,128], index: 2, kind: input, shape index: {}]   ;;  %s1305_s3 = inlined_call_operand.vmem [shape: f32[128,128], index: 3, kind: input, shape index: {}]   ;;  %s1306_s4 = inlined_call_operand.vmem [shape: f32[1,128], index: 4, kind: input, shape index: {}]   ;;  %s1307_s5 = inlined_call_operand.vmem [shape: f32[1,128], index: 5, kind: input, shape index: {}]   ;;  %s1308_s6 = inlined_call_operand.hbm [shape: f32[128,128], index: 6, kind: output, shape index: {}]  }
   0x1   :  { %v40_v0 = vld [vmem:[%s1303_s1] sm:$0xff]  ;;  %v41_v1 = vld [vmem:[%s1303_s1 + $0x8] sm:$0xff]  ;;  %v26_v5 = vld [vmem:[%s1302_s0 + $0x10] sm:$0xff] }
   0x2   :  { %v24_v2 = vld [vmem:[%s1302_s0] sm:$0xff]  ;;  %v828_v3 = vpack.c.bf16 %v41_v1, %v40_v0  ;;  %v25_v4 = vld [vmem:[%s1302_s0 + $0x8] sm:$0xff]  ;;  %v261_v8 = vld [vmem:[%s1305_s3 + $0x10] sm:$0xff] }
   0x3   :  { %748 = vmatprep.mubr.msk.f32.mxu0 %vm49_vm0, %v24_v2  ;;  %v259_v6 = vld [vmem:[%s1305_s3] sm:$0xff]  ;;  %v260_v7 = vld [vmem:[%s1305_s3 + $0x8] sm:$0xff]  ;;  %v262_v10 = vld [vmem:[%s1305_s3 + $0x18] sm:$0xff] }
   0x4   :  { %829 = vmatprep.subr.bf16.mxu0 %v828_v3  ;;  %v832_v9 = vpack.c.bf16 %v260_v7, %v259_v6  ;;  %v27_v11 = vld [vmem:[%s1302_s0 + $0x18] sm:$0xff]  ;;  %v836_v12 = vpack.c.bf16 %v262_v10, %v261_v8  ;;  %v263_v13 = vld [vmem:[%s1305_s3 + $0x20] sm:$0xff]  ;;  %v264_v14 = vld [vmem:[%s1305_s3 + $0x28] sm:$0xff] }
   0x5   :  { %831 = vmatpush3.bf16.msra.mxu0 %v828_v3  ;;  %v28_v15 = vld [vmem:[%s1302_s0 + $0x20] sm:$0xff] }
   0x6   :  { %833 = vmatprep.subr.bf16.mxu0 %v832_v9  ;;  %864 = vmatprep.subr.bf16.mxu1 %v832_v9 }
   0x8   :  { %749 = vmatmul.mubr.msk.f32.vlgmr.msra.gmra.mrb[0].mxu0 %vm49_vm0, %v25_v4 }
   0x9   :  { %751 = vmatprep.mubr.msk.f32.mxu0 %vm49_vm0, %v26_v5 }
   0xa   :  { %11 = vsyncpa [#allocation3], 0  ;;  %835 = vmatpush3.bf16.msra.mxu0 %v832_v9  ;;  %872 = vmatpush3.bf16.msra.mxu1 %v832_v9  ;;  %v840_v16 = vpack.c.bf16 %v264_v14, %v263_v13  ;;  %v29_v17 = vld [vmem:[%s1302_s0 + $0x28] sm:$0xff]  ;;  %v265_v18 = vld [vmem:[%s1305_s3 + $0x30] sm:$0xff] }
   0xb   :  { %837 = vmatprep.subr.bf16.mxu0 %v836_v12  ;;  %v266_v19 = vld [vmem:[%s1305_s3 + $0x38] sm:$0xff]  ;;  %865 = vmatprep.subr.bf16.mxu1 %v836_v12  ;;  %v30_v20 = vld [vmem:[%s1302_s0 + $0x30] sm:$0xff]  ;;  %v267_v23 = vld [vmem:[%s1305_s3 + $0x40] sm:$0xff] }
   0xc   :  { %752 = vmatmul.mubr.msk.f32.gmra.mrb[2].mxu0 %vm49_vm0, %v27_v11  ;;  %v844_v21 = vpack.c.bf16 %v266_v19, %v265_v18  ;;  %v31_v22 = vld [vmem:[%s1302_s0 + $0x38] sm:$0xff]  ;;  %v268_v24 = vld [vmem:[%s1305_s3 + $0x48] sm:$0xff]  ;;  %v32_v25 = vld [vmem:[%s1302_s0 + $0x40] sm:$0xff] }
   0xd   :  { %754 = vmatprep.mubr.msk.f32.mxu0 %vm49_vm0, %v28_v15  ;;  %v848_v26 = vpack.c.bf16 %v268_v24, %v267_v23  ;;  %v33_v27 = vld [vmem:[%s1302_s0 + $0x48] sm:$0xff]  ;;  %v34_v28 = vld [vmem:[%s1302_s0 + $0x50] sm:$0xff]  ;;  %v35_v29 = vld [vmem:[%s1302_s0 + $0x58] sm:$0xff] }
   0xe   :  { %839 = vmatpush3.bf16.msra.mxu0 %v836_v12  ;;  %873 = vmatpush3.bf16.msra.mxu1 %v836_v12  ;;  %v36_v30 = vld [vmem:[%s1302_s0 + $0x60] sm:$0xff]  ;;  %v37_v31 = vld [vmem:[%s1302_s0 + $0x68] sm:$0xff]  ;;  %v38_v32 = vld [vmem:[%s1302_s0 + $0x70] sm:$0xff] }
   0xf   :  { %841 = vmatprep.subr.bf16.mxu0 %v840_v16  ;;  %866 = vmatprep.subr.bf16.mxu1 %v840_v16  ;;  %v39_v33 = vld [vmem:[%s1302_s0 + $0x78] sm:$0xff]  ;;  %v269_v34 = vld [vmem:[%s1305_s3 + $0x50] sm:$0xff]  ;;  %v271_v37 = vld [vmem:[%s1305_s3 + $0x60] sm:$0xff] }
  0x10   :  { %755 = vmatmul.mubr.msk.f32.gmra.mrb[4].mxu0 %vm49_vm0, %v29_v17  ;;  %v270_v35 = vld [vmem:[%s1305_s3 + $0x58] sm:$0xff]  ;;  %v272_v38 = vld [vmem:[%s1305_s3 + $0x68] sm:$0xff]  ;;  %v273_v40 = vld [vmem:[%s1305_s3 + $0x70] sm:$0xff] }
  0x11   :  { %757 = vmatprep.mubr.msk.f32.mxu0 %vm49_vm0, %v30_v20  ;;  %v852_v36 = vpack.c.bf16 %v270_v35, %v269_v34  ;;  %v856_v39 = vpack.c.bf16 %v272_v38, %v271_v37  ;;  %v274_v41 = vld [vmem:[%s1305_s3 + $0x78] sm:$0xff]  ;;  %v1130_v43 = vld [vmem:[%s1304_s2] ss:$0 sm:$0xff] }
  0x12   :  { %843 = vmatpush3.bf16.msra.mxu0 %v840_v16  ;;  %874 = vmatpush3.bf16.msra.mxu1 %v840_v16  ;;  %v860_v42 = vpack.c.bf16 %v274_v41, %v273_v40 }
  0x13   :  { %845 = vmatprep.subr.bf16.mxu0 %v844_v21  ;;  %867 = vmatprep.subr.bf16.mxu1 %v844_v21 }
  0x14   :  { %758 = vmatmul.mubr.msk.f32.gmra.mrb[6].mxu0 %vm49_vm0, %v31_v22 }
  0x15   :  { %760 = vmatprep.mubr.msk.f32.mxu0 %vm49_vm0, %v32_v25 }
  0x16   :  { %847 = vmatpush3.bf16.msra.mxu0 %v844_v21  ;;  %875 = vmatpush3.bf16.msra.mxu1 %v844_v21 }
  0x17   :  { %849 = vmatprep.subr.bf16.mxu0 %v848_v26  ;;  %868 = vmatprep.subr.bf16.mxu1 %v848_v26 }
  0x18   :  { %761 = vmatmul.mubr.msk.f32.gmra.mrb[8].mxu0 %vm49_vm0, %v33_v27 }
  0x19   :  { %763 = vmatprep.mubr.msk.f32.mxu0 %vm49_vm0, %v34_v28 }
  0x1a   :  { %851 = vmatpush3.bf16.msra.mxu0 %v848_v26  ;;  %876 = vmatpush3.bf16.msra.mxu1 %v848_v26 }
  0x1b   :  { %853 = vmatprep.subr.bf16.mxu0 %v852_v36  ;;  %869 = vmatprep.subr.bf16.mxu1 %v852_v36 }
  0x1c   :  { %764 = vmatmul.mubr.msk.f32.gmra.mrb[10].mxu0 %vm49_vm0, %v35_v29 }
  0x1d   :  { %766 = vmatprep.mubr.msk.f32.mxu0 %vm49_vm0, %v36_v30 }
  0x1e   :  { %855 = vmatpush3.bf16.msra.mxu0 %v852_v36  ;;  %877 = vmatpush3.bf16.msra.mxu1 %v852_v36 }
  0x1f   :  { %857 = vmatprep.subr.bf16.mxu0 %v856_v39  ;;  %870 = vmatprep.subr.bf16.mxu1 %v856_v39 }
  0x20   :  { %767 = vmatmul.mubr.msk.f32.gmra.mrb[12].mxu0 %vm49_vm0, %v37_v31 }
  0x21   :  { %769 = vmatprep.mubr.msk.f32.mxu0 %vm49_vm0, %v38_v32 }
  0x22   :  { %859 = vmatpush3.bf16.msra.mxu0 %v856_v39  ;;  %878 = vmatpush3.bf16.msra.mxu1 %v856_v39 }
  0x23   :  { %861 = vmatprep.subr.bf16.mxu0 %v860_v42  ;;  %871 = vmatprep.subr.bf16.mxu1 %v860_v42 }
  0x24   :  { %770 = vmatmul.mubr.msk.f32.gmra.mrb[14].mxu0 %vm49_vm0, %v39_v33 }
  0x26   :  { %863 = vmatpush3.bf16.msra.mxu0 %v860_v42  ;;  %879 = vmatpush3.bf16.msra.mxu1 %v860_v42 }
  0xdb   :  { %v750_v44 = vpop.f32.mrb[0].mxu0 }
  0xdc   :  { %v170_v45 = vadd.f32 %v750_v44, %v1130_v43  ;;  %v164_v46 = vpop.f32.mrb[1].mxu0 }
  0xdd   :  { %v165_v47 = vadd.f32 %v1130_v43, %v164_v46 }
  0xdf   :  { %883 = vtanh.f32 %v165_v47  ;;  %v753_v48 = vpop.f32.mrb[2].mxu0 }
  0xe0   :  { %885 = vtanh.f32 %v170_v45  ;;  %v180_v49 = vadd.f32 %v753_v48, %v1130_v43  ;;  %v174_v50 = vpop.f32.mrb[3].mxu0 }
  0xe1   :  { %v175_v51 = vadd.f32 %v1130_v43, %v174_v50 }
  0xe3   :  { %887 = vtanh.f32 %v175_v51  ;;  %v756_v52 = vpop.f32.mrb[4].mxu0 }
  0xe4   :  { %889 = vtanh.f32 %v180_v49  ;;  %v190_v53 = vadd.f32 %v756_v52, %v1130_v43  ;;  %v184_v54 = vpop.f32.mrb[5].mxu0 }
  0xe5   :  { %v185_v55 = vadd.f32 %v1130_v43, %v184_v54 }
  0xe6   :  { %891 = vtanh.f32 %v190_v53 }
  0xe7   :  { %893 = vtanh.f32 %v185_v55  ;;  %v759_v56 = vpop.f32.mrb[6].mxu0 }
  0xe8   :  { %v200_v57 = vadd.f32 %v759_v56, %v1130_v43  ;;  %v194_v58 = vpop.f32.mrb[7].mxu0 }
  0xe9   :  { %v884_v59 = vpop.eup %883  ;;  %v195_v60 = vadd.f32 %v1130_v43, %v194_v58 }
  0xea   :  { %v886_v61 = vpop.eup %885  ;;  %895 = vtanh.f32 %v200_v57  ;;  %804 = vmatprep.mubr.f32.mxu0 %v884_v59 }
  0xeb   :  { %897 = vtanh.f32 %v195_v60  ;;  %v762_v62 = vpop.f32.mrb[8].mxu0  ;;  %805 = vmatmul.mubr.f32.vlgmr.msra.gmra.mrb[16].mxu0 %v886_v61 }
  0xec   :  { %v210_v63 = vadd.f32 %v762_v62, %v1130_v43  ;;  %v204_v0 = vpop.f32.mrb[9].mxu0 }
  0xed   :  { %v888_v1 = vpop.eup %887  ;;  %v205_v2 = vadd.f32 %v1130_v43, %v204_v0 }
  0xee   :  { %v890_v3 = vpop.eup %889  ;;  %899 = vtanh.f32 %v210_v63  ;;  %807 = vmatprep.mubr.f32.mxu0 %v888_v1 }
  0xef   :  { %901 = vtanh.f32 %v205_v2  ;;  %v765_v4 = vpop.f32.mrb[10].mxu0  ;;  %808 = vmatmul.mubr.f32.gmra.mrb[18].mxu0 %v890_v3 }
  0xf0   :  { %v892_v5 = vpop.eup %891  ;;  %v220_v6 = vadd.f32 %v765_v4, %v1130_v43  ;;  %v214_v7 = vpop.f32.mrb[11].mxu0 }
  0xf1   :  { %v894_v8 = vpop.eup %893  ;;  %v215_v9 = vadd.f32 %v1130_v43, %v214_v7 }
  0xf2   :  { %903 = vtanh.f32 %v220_v6  ;;  %810 = vmatprep.mubr.f32.mxu0 %v894_v8 }
  0xf3   :  { %905 = vtanh.f32 %v215_v9  ;;  %v768_v10 = vpop.f32.mrb[12].mxu0  ;;  %811 = vmatmul.mubr.f32.gmra.mrb[20].mxu0 %v892_v5 }
  0xf4   :  { %v896_v11 = vpop.eup %895  ;;  %v230_v12 = vadd.f32 %v768_v10, %v1130_v43  ;;  %v224_v13 = vpop.f32.mrb[13].mxu0 }
  0xf5   :  { %v898_v14 = vpop.eup %897  ;;  %v225_v15 = vadd.f32 %v1130_v43, %v224_v13 }
  0xf6   :  { %907 = vtanh.f32 %v230_v12  ;;  %813 = vmatprep.mubr.f32.mxu1 %v898_v14 }
  0xf7   :  { %909 = vtanh.f32 %v225_v15  ;;  %v771_v16 = vpop.f32.mrb[14].mxu0  ;;  %814 = vmatmul.mubr.f32.vlgmr.msra.gmra.mrb[0].mxu1 %v896_v11 }
  0xf8   :  { %v900_v17 = vpop.eup %899  ;;  %v240_v18 = vadd.f32 %v771_v16, %v1130_v43  ;;  %v234_v19 = vpop.f32.mrb[15].mxu0 }
  0xf9   :  { %v902_v20 = vpop.eup %901  ;;  %v235_v21 = vadd.f32 %v1130_v43, %v234_v19 }
  0xfa   :  { %911 = vtanh.f32 %v240_v18  ;;  %816 = vmatprep.mubr.f32.mxu1 %v902_v20 }
  0xfb   :  { %913 = vtanh.f32 %v235_v21  ;;  %817 = vmatmul.mubr.f32.gmra.mrb[2].mxu1 %v900_v17 }
  0xfc   :  { %v904_v22 = vpop.eup %903 }
  0xfd   :  { %v906_v23 = vpop.eup %905 }
  0xfe   :  { %819 = vmatprep.mubr.f32.mxu1 %v906_v23 }
  0xff   :  { %820 = vmatmul.mubr.f32.gmra.mrb[4].mxu1 %v904_v22 }
 0x100   :  { %v908_v24 = vpop.eup %907 }
 0x101   :  { %v910_v25 = vpop.eup %909 }
 0x102   :  { %822 = vmatprep.mubr.f32.mxu1 %v910_v25 }
 0x103   :  { %823 = vmatmul.mubr.f32.gmra.mrb[6].mxu1 %v908_v24 }
 0x104   :  { %v912_v26 = vpop.eup %911 }
 0x105   :  { %v914_v27 = vpop.eup %913 }
 0x106   :  { %825 = vmatprep.mubr.f32.mxu1 %v914_v27 }
 0x107   :  { %826 = vmatmul.mubr.f32.gmra.mrb[8].mxu1 %v912_v26 }
 0x1be   :  { %v806_v28 = vpop.f32.mrb[16].mxu0 }
 0x1bf   :  { %422 = vadd.xlane.f32.xlu0 %v806_v28  ;;  %v341_v29 = vpop.f32.mrb[17].mxu0 }
 0x1c2   :  { %v809_v30 = vpop.f32.mrb[18].mxu0 }
 0x1c3   :  { %420 = vadd.xlane.f32.xlu0 %v341_v29  ;;  %426 = vadd.xlane.f32.xlu1 %v809_v30  ;;  %v351_v31 = vpop.f32.mrb[19].mxu0 }
 0x1c6   :  { %v812_v32 = vpop.f32.mrb[20].mxu0 }
 0x1c7   :  { %424 = vadd.xlane.f32.xlu1 %v351_v31  ;;  %v361_v33 = vpop.f32.mrb[21].mxu0 }
 0x1c8   :  { %428 = vadd.xlane.f32.xlu0 %v361_v33 }
 0x1ca   :  { %v815_v34 = vpop.f32.mrb[0].mxu1 }
 0x1cb   :  { %v371_v35 = vpop.f32.mrb[1].mxu1  ;;  %430 = vadd.xlane.f32.xlu1 %v812_v32 }
 0x1cc   :  { %432 = vadd.xlane.f32.xlu0 %v371_v35 }
 0x1ce   :  { %v818_v36 = vpop.f32.mrb[2].mxu1 }
 0x1cf   :  { %v381_v37 = vpop.f32.mrb[3].mxu1  ;;  %434 = vadd.xlane.f32.xlu1 %v815_v34 }
 0x1d0   :  { %436 = vadd.xlane.f32.xlu0 %v381_v37 }
 0x1d2   :  { %v1148_v38 = vpop.f32.mrb[4].mxu1 }
 0x1d3   :  { %v391_v39 = vpop.f32.mrb[5].mxu1  ;;  %438 = vadd.xlane.f32.xlu1 %v818_v36 }
 0x1d4   :  { %440 = vadd.xlane.f32.xlu0 %v391_v39 }
 0x1d6   :  { %v1150_v40 = vpop.f32.mrb[6].mxu1 }
 0x1d7   :  { %v1152_v41 = vpop.f32.mrb[7].mxu1  ;;  %442 = vadd.xlane.f32.xlu1 %v1148_v38 }
 0x1d8   :  { %444 = vadd.xlane.f32.xlu0 %v1152_v41 }
 0x1da   :  { %v1156_v42 = vpop.f32.mrb[8].mxu1 }
 0x1db   :  { %v1158_v43 = vpop.f32.mrb[9].mxu1  ;;  %446 = vadd.xlane.f32.xlu1 %v1150_v40 }
 0x1dc   :  { %448 = vadd.xlane.f32.xlu0 %v1158_v43 }
 0x1df   :  { %450 = vadd.xlane.f32.xlu1 %v1156_v42 }
 0x24c   :  { %v423_v44 = vpop.xlane.xlu0 %422 }
 0x24d   :  { %v454_v45 = vmul.f32 0.0078125, %v423_v44 }
 0x24f   :  { %v1163_v46 = vsub.f32 %v806_v28, %v454_v45 }
 0x250   :  { %v421_v47 = vpop.xlane.xlu0 %420  ;;  %v427_v48 = vpop.xlane.xlu1 %426 }
 0x251   :  { %v453_v49 = vmul.f32 0.0078125, %v421_v47  ;;  %v456_v50 = vmul.f32 0.0078125, %v427_v48  ;;  %v486_v51 = vmul.f32 %v1163_v46, %v1163_v46 }
 0x253   :  { %v1167_v52 = vsub.f32 %v341_v29, %v453_v49  ;;  %v1169_v53 = vsub.f32 %v809_v30, %v456_v50  ;;  %503 = vadd.xlane.f32.xlu1 %v486_v51 }
 0x254   :  { %v425_v54 = vpop.xlane.xlu1 %424 }
 0x255   :  { %v455_v55 = vmul.f32 0.0078125, %v425_v54  ;;  %v429_v56 = vpop.xlane.xlu0 %428  ;;  %v488_v57 = vmul.f32 %v1169_v53, %v1169_v53  ;;  %v485_v58 = vmul.f32 %v1167_v52, %v1167_v52 }
 0x256   :  { %v457_v59 = vmul.f32 0.0078125, %v429_v56 }
 0x257   :  { %v1175_v60 = vsub.f32 %v351_v31, %v455_v55  ;;  %507 = vadd.xlane.f32.xlu1 %v488_v57  ;;  %501 = vadd.xlane.f32.xlu0 %v485_v58 }
 0x258   :  { %v431_v61 = vpop.xlane.xlu1 %430  ;;  %v1177_v62 = vsub.f32 %v361_v33, %v457_v59 }
 0x259   :  { %v458_v63 = vmul.f32 0.0078125, %v431_v61  ;;  %v433_v0 = vpop.xlane.xlu0 %432  ;;  %v487_v1 = vmul.f32 %v1175_v60, %v1175_v60 }
 0x25a   :  { %v459_v2 = vmul.f32 0.0078125, %v433_v0  ;;  %v489_v9 = vmul.f32 %v1177_v62, %v1177_v62 }
 0x25b   :  { %v1181_v3 = vsub.f32 %v812_v32, %v458_v63  ;;  %505 = vadd.xlane.f32.xlu0 %v487_v1 }
 0x25c   :  { %v435_v4 = vpop.xlane.xlu1 %434  ;;  %v1183_v5 = vsub.f32 %v371_v35, %v459_v2  ;;  %v1235_v2 = vld [vmem:[%s1306_s4] ss:$0 sm:$0xff]  ;;  %s971_s4 = smov [#allocation2]  }
 0x25d   :  { %v460_v6 = vmul.f32 0.0078125, %v435_v4  ;;  %v437_v7 = vpop.xlane.xlu0 %436  ;;  %v490_v8 = vmul.f32 %v1181_v3, %v1181_v3 }
 0x25e   :  { %v461_v10 = vmul.f32 0.0078125, %v437_v7  ;;  %v491_v17 = vmul.f32 %v1183_v5, %v1183_v5 }
 0x25f   :  { %v1189_v11 = vsub.f32 %v815_v34, %v460_v6  ;;  %511 = vadd.xlane.f32.xlu1 %v490_v8  ;;  %509 = vadd.xlane.f32.xlu0 %v489_v9 }
 0x260   :  { %v439_v12 = vpop.xlane.xlu1 %438  ;;  %v1191_v13 = vsub.f32 %v381_v37, %v461_v10  ;;  %v1241_v10 = vld [vmem:[%s1307_s5] ss:$0 sm:$0xff]  ;;  %s664_s5 = sshll.u32 %s971_s4, 4  ;;  %s665_s5 = int_to_ptr.vmem [resolvable:$true] %s664_s5 }
 0x261   :  { %v462_v14 = vmul.f32 0.0078125, %v439_v12  ;;  %v441_v15 = vpop.xlane.xlu0 %440  ;;  %v492_v16 = vmul.f32 %v1189_v11, %v1189_v11  ;;  %s947_s17 = scalar_lea.vmem %s665_s5, 2048  ;;  %p952_p1 = scmp.lt.s32.totalorder %s665_s5, %s665_s5 }
 0x262   :  { %v463_v18 = vmul.f32 0.0078125, %v441_v15  ;;  %v493_v25 = vmul.f32 %v1191_v13, %v1191_v13  ;;  %p948_p0 = scmp.ne.s32.totalorder %s665_s5, %s947_s17  ;;  %p953_p2 = scmp.lt.s32.totalorder %s947_s17, %s947_s17 }
 0x263   :  { %v1197_v19 = vsub.f32 %v818_v36, %v462_v14  ;;  %515 = vadd.xlane.f32.xlu1 %v492_v16  ;;  %513 = vadd.xlane.f32.xlu0 %v491_v17 }
 0x264   :  { %v443_v20 = vpop.xlane.xlu1 %442  ;;  %v1199_v21 = vsub.f32 %v391_v39, %v463_v18  ;;  %p954_p3 = por %p953_p2, %p952_p1 }
 0x265   :  { %v464_v22 = vmul.f32 0.0078125, %v443_v20  ;;  %v445_v23 = vpop.xlane.xlu0 %444  ;;  %v494_v24 = vmul.f32 %v1197_v19, %v1197_v19 }
 0x266   :  { %v465_v26 = vmul.f32 0.0078125, %v445_v23  ;;  %v495_v33 = vmul.f32 %v1199_v21, %v1199_v21  ;;  %p955_p4 = pnand %p954_p3, %p948_p0 }
 0x267   :  { %v1206_v27 = vsub.f32 %v1148_v38, %v464_v22  ;;  %519 = vadd.xlane.f32.xlu1 %v494_v24  ;;  %517 = vadd.xlane.f32.xlu0 %v493_v25 }
 0x268   :  { %v447_v28 = vpop.xlane.xlu1 %446  ;;  %v1209_v29 = vsub.f32 %v1152_v41, %v465_v26 }
 0x269   :  { %v466_v30 = vmul.f32 0.0078125, %v447_v28  ;;  %v449_v31 = vpop.xlane.xlu0 %448  ;;  %v496_v32 = vmul.f32 %v1206_v27, %v1206_v27 }
 0x26a   :  { %v467_v34 = vmul.f32 0.0078125, %v449_v31  ;;  %v497_v41 = vmul.f32 %v1209_v29, %v1209_v29 }
 0x26b   :  { %v1216_v35 = vsub.f32 %v1150_v40, %v466_v30  ;;  %523 = vadd.xlane.f32.xlu1 %v496_v32  ;;  %521 = vadd.xlane.f32.xlu0 %v495_v33 }
 0x26c   :  { %v451_v36 = vpop.xlane.xlu1 %450  ;;  %v1219_v37 = vsub.f32 %v1158_v43, %v467_v34 }
 0x26d   :  { %v468_v38 = vmul.f32 0.0078125, %v451_v36  ;;  %v498_v39 = vmul.f32 %v1216_v35, %v1216_v35 }
 0x26e   :  { %v499_v45 = vmul.f32 %v1219_v37, %v1219_v37 }
 0x26f   :  { %v1226_v44 = vsub.f32 %v1156_v42, %v468_v38  ;;  %527 = vadd.xlane.f32.xlu1 %v498_v39  ;;  %525 = vadd.xlane.f32.xlu0 %v497_v41 }
 0x271   :  { %v500_v40 = vmul.f32 %v1226_v44, %v1226_v44 }
 0x273   :  { %531 = vadd.xlane.f32.xlu1 %v500_v40  ;;  %529 = vadd.xlane.f32.xlu0 %v499_v45 }
 0x2e0   :  { %v504_v43 = vpop.xlane.xlu1 %503 }
 0x2e1   :  { %v534_v47 = vmul.f32 0.0078125, %v504_v43 }
 0x2e3   :  { %v550_v48 = vadd.f32 1e-05, %v534_v47 }
 0x2e4   :  { %v508_v49 = vpop.xlane.xlu1 %507  ;;  %v502_v50 = vpop.xlane.xlu0 %501 }
 0x2e5   :  { %915 = vrsqrt.f32 %v550_v48  ;;  %v536_v51 = vmul.f32 0.0078125, %v508_v49  ;;  %v533_v54 = vmul.f32 0.0078125, %v502_v50 }
 0x2e7   :  { %v552_v42 = vadd.f32 1e-05, %v536_v51  ;;  %v549_v55 = vadd.f32 1e-05, %v533_v54 }
 0x2e8   :  { %v506_v56 = vpop.xlane.xlu0 %505 }
 0x2e9   :  { %917 = vrsqrt.f32 %v552_v42  ;;  %v535_v57 = vmul.f32 0.0078125, %v506_v56 }
 0x2ea   :  { %919 = vrsqrt.f32 %v549_v55 }
 0x2eb   :  { %v551_v58 = vadd.f32 1e-05, %v535_v57 }
 0x2ec   :  { %v512_v59 = vpop.xlane.xlu1 %511  ;;  %v510_v61 = vpop.xlane.xlu0 %509 }
 0x2ed   :  { %921 = vrsqrt.f32 %v551_v58  ;;  %v538_v63 = vmul.f32 0.0078125, %v512_v59  ;;  %v537_v0 = vmul.f32 0.0078125, %v510_v61 }
 0x2ef   :  { %v916_v1 = vpop.eup %915  ;;  %v554_v4 = vadd.f32 1e-05, %v538_v63  ;;  %v553_v6 = vadd.f32 1e-05, %v537_v0 }
 0x2f0   :  { %v582_v7 = vmul.f32 %v916_v1, %v1163_v46  ;;  %v516_v8 = vpop.xlane.xlu1 %515  ;;  %v514_v9 = vpop.xlane.xlu0 %513 }
 0x2f1   :  { %923 = vrsqrt.f32 %v554_v4  ;;  %v540_v12 = vmul.f32 0.0078125, %v516_v8  ;;  %v539_v14 = vmul.f32 0.0078125, %v514_v9 }
 0x2f2   :  { %v605_v15 = vmul.f32 %v1235_v2, %v582_v7  ;;  %925 = vrsqrt.f32 %v553_v6 }
 0x2f3   :  { %v918_v16 = vpop.eup %917  ;;  %v556_v17 = vadd.f32 1e-05, %v540_v12  ;;  %v555_v18 = vadd.f32 1e-05, %v539_v14 }
 0x2f4   :  { %v920_v20 = vpop.eup %919  ;;  %v628_v22 = vadd.f32 %v1241_v10, %v605_v15  ;;  %v584_v46 = vmul.f32 %v918_v16, %v1169_v53  ;;  %v520_v23 = vpop.xlane.xlu1 %519 }
 0x2f5   :  { %v518_v24 = vpop.xlane.xlu0 %517  ;;  %v581_v25 = vmul.f32 %v920_v20, %v1167_v52  ;;  %927 = vrsqrt.f32 %v556_v17  ;;  %v542_v26 = vmul.f32 0.0078125, %v520_v23 }
 0x2f6   :  { %v541_v28 = vmul.f32 0.0078125, %v518_v24  ;;  %644 = vst [vmem:[#allocation2 + $0x8] sm:$0xff] %v628_v22  ;;  %v607_v30 = vmul.f32 %v1235_v2, %v584_v46  ;;  %929 = vrsqrt.f32 %v555_v18 }
 0x2f7   :  { %v922_v31 = vpop.eup %921  ;;  %v604_v32 = vmul.f32 %v1235_v2, %v581_v25  ;;  %v558_v33 = vadd.f32 1e-05, %v542_v26 }
 0x2f8   :  { %v557_v34 = vadd.f32 1e-05, %v541_v28  ;;  %v630_v36 = vadd.f32 %v1241_v10, %v607_v30  ;;  %v583_v53 = vmul.f32 %v922_v31, %v1175_v60  ;;  %v524_v38 = vpop.xlane.xlu1 %523 }
 0x2f9   :  { %v522_v39 = vpop.xlane.xlu0 %521  ;;  %v627_v52 = vadd.f32 %v1241_v10, %v604_v32  ;;  %931 = vrsqrt.f32 %v558_v33  ;;  %v544_v41 = vmul.f32 0.0078125, %v524_v38 }
 0x2fa   :  { %v543_v40 = vmul.f32 0.0078125, %v522_v39  ;;  %646 = vst [vmem:[#allocation2 + $0x18] sm:$0xff] %v630_v36  ;;  %v606_v45 = vmul.f32 %v1235_v2, %v583_v53  ;;  %933 = vrsqrt.f32 %v557_v34 }
 0x2fb   :  { %v924_v43 = vpop.eup %923  ;;  %643 = vst [vmem:[#allocation2] sm:$0xff] %v627_v52  ;;  %v560_v47 = vadd.f32 1e-05, %v544_v41 }
 0x2fc   :  { %v559_v48 = vadd.f32 1e-05, %v543_v40  ;;  %v926_v49 = vpop.eup %925  ;;  %v629_v50 = vadd.f32 %v1241_v10, %v606_v45  ;;  %v586_v60 = vmul.f32 %v924_v43, %v1181_v3  ;;  %v528_v51 = vpop.xlane.xlu1 %527 }
 0x2fd   :  { %v526_v54 = vpop.xlane.xlu0 %525  ;;  %v585_v42 = vmul.f32 %v926_v49, %v1177_v62  ;;  %935 = vrsqrt.f32 %v560_v47  ;;  %v546_v55 = vmul.f32 0.0078125, %v528_v51 }
 0x2fe   :  { %v545_v56 = vmul.f32 0.0078125, %v526_v54  ;;  %645 = vst [vmem:[#allocation2 + $0x10] sm:$0xff] %v629_v50  ;;  %v609_v57 = vmul.f32 %v1235_v2, %v586_v60  ;;  %937 = vrsqrt.f32 %v559_v48 }
 0x2ff   :  { %v928_v58 = vpop.eup %927  ;;  %v608_v59 = vmul.f32 %v1235_v2, %v585_v42  ;;  %v562_v61 = vadd.f32 1e-05, %v546_v55 }
 0x300   :  { %v561_v63 = vadd.f32 1e-05, %v545_v56  ;;  %v930_v0 = vpop.eup %929  ;;  %v632_v1 = vadd.f32 %v1241_v10, %v609_v57  ;;  %v588_v3 = vmul.f32 %v928_v58, %v1189_v11  ;;  %v532_v4 = vpop.xlane.xlu1 %531 }
 0x301   :  { %v530_v6 = vpop.xlane.xlu0 %529  ;;  %v631_v62 = vadd.f32 %v1241_v10, %v608_v59  ;;  %v587_v7 = vmul.f32 %v930_v0, %v1183_v5  ;;  %939 = vrsqrt.f32 %v562_v61  ;;  %v548_v8 = vmul.f32 0.0078125, %v532_v4 }
 0x302   :  { %648 = vst [vmem:[#allocation2 + $0x28] sm:$0xff] %v632_v1  ;;  %v611_v9 = vmul.f32 %v1235_v2, %v588_v3  ;;  %941 = vrsqrt.f32 %v561_v63  ;;  %v547_v12 = vmul.f32 0.0078125, %v530_v6 }
 0x303   :  { %v932_v14 = vpop.eup %931  ;;  %647 = vst [vmem:[#allocation2 + $0x20] sm:$0xff] %v631_v62  ;;  %v610_v15 = vmul.f32 %v1235_v2, %v587_v7  ;;  %v564_v16 = vadd.f32 1e-05, %v548_v8 }
 0x304   :  { %v934_v17 = vpop.eup %933  ;;  %v634_v11 = vadd.f32 %v1241_v10, %v611_v9  ;;  %v590_v18 = vmul.f32 %v932_v14, %v1197_v19  ;;  %v563_v20 = vadd.f32 1e-05, %v547_v12 }
 0x305   :  { %v633_v5 = vadd.f32 %v1241_v10, %v610_v15  ;;  %v589_v22 = vmul.f32 %v934_v17, %v1191_v13  ;;  %943 = vrsqrt.f32 %v564_v16 }
 0x306   :  { %650 = vst [vmem:[#allocation2 + $0x38] sm:$0xff] %v634_v11  ;;  %v613_v46 = vmul.f32 %v1235_v2, %v590_v18  ;;  %945 = vrsqrt.f32 %v563_v20 }
 0x307   :  { %v936_v23 = vpop.eup %935  ;;  %649 = vst [vmem:[#allocation2 + $0x30] sm:$0xff] %v633_v5  ;;  %v612_v24 = vmul.f32 %v1235_v2, %v589_v22 }
 0x308   :  { %v938_v25 = vpop.eup %937  ;;  %v636_v26 = vadd.f32 %v1241_v10, %v613_v46  ;;  %v592_v28 = vmul.f32 %v936_v23, %v1206_v27 }
 0x309   :  { %v635_v19 = vadd.f32 %v1241_v10, %v612_v24  ;;  %v591_v30 = vmul.f32 %v938_v25, %v1199_v21 }
 0x30a   :  { %652 = vst [vmem:[#allocation2 + $0x48] sm:$0xff] %v636_v26  ;;  %v615_v13 = vmul.f32 %v1235_v2, %v592_v28 }
 0x30b   :  { %v940_v31 = vpop.eup %939  ;;  %651 = vst [vmem:[#allocation2 + $0x40] sm:$0xff] %v635_v19  ;;  %v614_v32 = vmul.f32 %v1235_v2, %v591_v30 }
 0x30c   :  { %v942_v33 = vpop.eup %941  ;;  %v638_v34 = vadd.f32 %v1241_v10, %v615_v13  ;;  %v594_v36 = vmul.f32 %v940_v31, %v1216_v35 }
 0x30d   :  { %v637_v53 = vadd.f32 %v1241_v10, %v614_v32  ;;  %v593_v27 = vmul.f32 %v942_v33, %v1209_v29 }
 0x30e   :  { %654 = vst [vmem:[#allocation2 + $0x58] sm:$0xff] %v638_v34  ;;  %v617_v38 = vmul.f32 %v1235_v2, %v594_v36 }
 0x30f   :  { %v944_v21 = vpop.eup %943  ;;  %653 = vst [vmem:[#allocation2 + $0x50] sm:$0xff] %v637_v53  ;;  %v616_v39 = vmul.f32 %v1235_v2, %v593_v27 }
 0x310   :  { %v946_v52 = vpop.eup %945  ;;  %v640_v41 = vadd.f32 %v1241_v10, %v617_v38  ;;  %v596_v40 = vmul.f32 %v944_v21, %v1226_v44 }
 0x311   :  { %v639_v45 = vadd.f32 %v1241_v10, %v616_v39  ;;  %v595_v35 = vmul.f32 %v946_v52, %v1219_v37 }
 0x312   :  { %656 = vst [vmem:[#allocation2 + $0x68] sm:$0xff] %v640_v41  ;;  %v619_v29 = vmul.f32 %v1235_v2, %v596_v40 }
 0x313   :  { %655 = vst [vmem:[#allocation2 + $0x60] sm:$0xff] %v639_v45  ;;  %v618_v43 = vmul.f32 %v1235_v2, %v595_v35 }
 0x314   :  { %v642_v47 = vadd.f32 %v1241_v10, %v619_v29 }
 0x315   :  { %v641_v48 = vadd.f32 %v1241_v10, %v618_v43 }
 0x316   :  { %658 = vst [vmem:[#allocation2 + $0x78] sm:$0xff] %v642_v47 }
 0x317   :  { %657 = vst [vmem:[#allocation2 + $0x70] sm:$0xff] %v641_v48 }
 0x318   :  { %958 = shalt.err (!%p955_p4)
}
 0x319   :  { %s959_s20 = scalar_lea.hbm %s1308_s6, 2048 }
 0x31a   :  { %p960_p5 = scmp.ne.s32.totalorder %s1308_s6, %s959_s20  ;;  %p963_p6 = scmp.lt.u32.totalorder %s959_s20, %s1308_s6 }
 0x31c   :  { %p965_p7 = pnand %p963_p6, %p960_p5 }
 0x31e   :  { %968 = shalt.err (!%p965_p7)
}
 0x31f   :  { %s972_s25 = smov 128   ;;  %s973_s26 = smov 8  }
 0x320   :  { %670 = dma.vmem_to_hbm [thread:$0]  %s665_s5, 2048, %s1308_s6, [#allocation3], %s972_s25, %s972_s25, %s973_s26  }
 0x321   :  { %969 = dma.done.wait [#allocation3], 2048  }
 0x322   :  { %970 = vsyncadd [#allocation3], 4294965248 }
 0x323   :  { %674 = vsyncpa [#allocation3], 1 }

</bundles_post_ra>
